<compile_context>
chip_gen: v5e
topology: v5e:2x2
jax: 0.10.0
libtpu: 0.0.40
codegen_flags: <defaults>
</compile_context>

<pallas_src>
import functools
import math

import jax
import jax.numpy as jnp
from jax import lax
from jax.experimental import pallas as pl
from jax.experimental.pallas import tpu as pltpu


def _pow2_divisor(n: int) -> int:
    """Largest power of two dividing n (n > 0)."""
    return n & (-n)


def _pick_tile(hout: int, wout: int, tm_target: int) -> int:
    """Pick a flattened-output tile size TM that divides Hout*Wout exactly,
    covers whole output rows, and is lane-dense (multiple of 128) when tiling."""
    m = hout * wout
    if m <= tm_target:
        return m
    for th in range(hout, 0, -1):
        if hout % th:
            continue
        cand = th * wout
        if cand <= tm_target and cand % 128 == 0:
            return cand
    return m  # fallback: single full tile per batch


# ----------------------------- Pallas kernel ------------------------------ #
def _conv_tap_kernel(x_ref, w_ref, b_ref, o_ref, *, kh_taps, kw_taps, wout, tm,
                     fuse_rows):
    """Fused per-tap conv matmul.

    x_ref: (1, T, L, Cin) column-windowed input slab (resident per batch)
           T = kW,     L = Hp*Wout      when fuse_rows (stride == 1)
           T = kH*kW,  L = Hout*Wout    otherwise
    w_ref: (kH*kW, Cout, Cin)   resident
    b_ref: (Cout, 1)            resident
    o_ref: (1, Cout, TM)        lane-dense output tile
    """
    t = pl.program_id(1)
    p0 = t * tm
    cout = w_ref.shape[1]

    acc = jnp.zeros((cout, tm), jnp.float32)
    for kh in range(kh_taps):
        for kw in range(kw_taps):
            if fuse_rows:
                tap = kw
                start = p0 + kh * wout
                align = _pow2_divisor(math.gcd(tm, wout))
            else:
                tap = kh * kw_taps + kw
                start = p0
                align = _pow2_divisor(tm)
            if align > 1:
                start = pl.multiple_of(start, align)
            x_tap = x_ref[0, tap, pl.ds(start, tm), :]      # (TM, Cin)
            w_tap = w_ref[kh * kw_taps + kw]                # (Cout, Cin)
            # (Cout, Cin) contracted with (TM, Cin) on the last dims
            # -> (Cout, TM) on the MXU, f32 accumulation.
            acc = acc + lax.dot_general(
                w_tap, x_tap, (((1,), (1,)), ((), ())),
                preferred_element_type=jnp.float32)

    # Bias folded into the epilogue; lane-dense store of the whole tile.
    o_ref[0] = (acc + b_ref[...]).astype(o_ref.dtype)


# ------------------------------ ConvLayer --------------------------------- #
@functools.partial(jax.jit, static_argnames=("kernel_size", "stride",
                                             "tm_target", "compute_dtype"))
def conv_layer_forward(x_nchw, weight, bias, *, kernel_size, stride,
                       tm_target=1024, compute_dtype=jnp.float32):
    """ReflectionPad2d(kernel_size // 2) followed by Conv2d(kernel_size, stride).

    x_nchw:  (N, C_in, H, W) float32
    weight:  (C_out, C_in, kH, kW)  (PyTorch Conv2d layout)
    bias:    (C_out,)
    returns: (N, C_out, Hout, Wout) float32
    """
    N, Cin, H, W = x_nchw.shape
    Cout, _, kH, kW = weight.shape
    pad = kernel_size // 2
    s = stride

    # Reflection pad (pure data movement; matches nn.ReflectionPad2d).
    xp = jnp.pad(x_nchw, ((0, 0), (0, 0), (pad, pad), (pad, pad)),
                 mode="reflect")
    Hp, Wp = H + 2 * pad, W + 2 * pad
    Hout = (Hp - kH) // s + 1
    Wout = (Wp - kW) // s + 1
    M = Hout * Wout

    if s == 1:
        # Column-window only (~kW x the input, not kH*kW); the kH row taps are
        # fused inside the kernel as shifted sublane loads.
        cols = [xp[:, :, :, kw:kw + Wout] for kw in range(kW)]
        xw = jnp.stack(cols, axis=1)                    # (N, kW, Cin, Hp, Wout)
        xw = jnp.transpose(xw, (0, 1, 3, 4, 2))         # (N, kW, Hp, Wout, Cin)
        xw = xw.reshape(N, kW, Hp * Wout, Cin)
        T, L, fuse_rows = kW, Hp * Wout, True
    else:
        # Strided conv: pre-gather all taps (expansion ~ kH*kW / s**2).
        taps = []
        for kh in range(kH):
            for kw in range(kW):
                taps.append(xp[:, :, kh:kh + (Hout - 1) * s + 1:s,
                               kw:kw + (Wout - 1) * s + 1:s])
        xw = jnp.stack(taps, axis=1)                    # (N, kHkW, Cin, Hout, Wout)
        xw = jnp.transpose(xw, (0, 1, 3, 4, 2)).reshape(N, kH * kW, M, Cin)
        T, L, fuse_rows = kH * kW, M, False

    TM = _pick_tile(Hout, Wout, tm_target)
    num_tiles = M // TM

    # (Cout, Cin, kH, kW) -> (kH*kW, Cout, Cin); bias -> (Cout, 1).
    w_k = jnp.transpose(weight, (2, 3, 0, 1)).reshape(kH * kW, Cout, Cin)
    b2 = bias.astype(jnp.float32).reshape(Cout, 1)

    xw = xw.astype(compute_dtype)
    w_k = w_k.astype(compute_dtype)

    kernel = functools.partial(_conv_tap_kernel, kh_taps=kH, kw_taps=kW,
                               wout=Wout, tm=TM, fuse_rows=fuse_rows)

    out = pl.pallas_call(
        kernel,
        out_shape=jax.ShapeDtypeStruct((N, Cout, M), jnp.float32),
        grid_spec=pltpu.PrefetchScalarGridSpec(
            num_scalar_prefetch=0,
            grid=(N, num_tiles),
            in_specs=[
                # Per-batch input slab; block index constant along the tile
                # axis, so it stays resident in VMEM across output tiles.
                pl.BlockSpec((1, T, L, Cin), lambda n, t: (n, 0, 0, 0)),
                # Weights and bias are tiny and fully resident.
                pl.BlockSpec((kH * kW, Cout, Cin), lambda n, t: (0, 0, 0)),
                pl.BlockSpec((Cout, 1), lambda n, t: (0, 0)),
            ],
            out_specs=pl.BlockSpec((1, Cout, TM), lambda n, t: (n, 0, t)),
        ),
        compiler_params=pltpu.CompilerParams(
            dimension_semantics=("parallel", "parallel"),
            vmem_limit_bytes=48 * 1024 * 1024),
    )(xw, w_k, b2)

    # (N, Cout, Hout*Wout) -> (N, Cout, Hout, Wout): free reshape, already NCHW.
    return out.reshape(N, Cout, Hout, Wout)


# -------------------------------- main ------------------------------------ #
if __name__ == "__main__":
    # Small, module-consistent shapes: batch=2, in_channels=4, out_channels=8,
    # kernel_size=3, spatial=16.
    N, Cin, H, W = 2, 4, 16, 16
    Cout, K = 8, 3

    key = jax.random.PRNGKey(0)
    kx, kw_, kb = jax.random.split(key, 3)
    x = jax.random.normal(kx, (N, Cin, H, W), dtype=jnp.float32)
    weight = jax.random.normal(kw_, (Cout, Cin, K, K), dtype=jnp.float32) * 0.1
    bias = jax.random.normal(kb, (Cout,), dtype=jnp.float32) * 0.1

    pad = K // 2
    x_pad = jnp.pad(x, ((0, 0), (0, 0), (pad, pad), (pad, pad)), mode="reflect")

    for stride in (1, 2):
        out = conv_layer_forward(x, weight, bias, kernel_size=K, stride=stride)
        out = jax.block_until_ready(out)

        ref = jax.lax.conv_general_dilated(
            x_pad, weight, window_strides=(stride, stride), padding="VALID",
            dimension_numbers=("NCHW", "OIHW", "NCHW"),
        ) + bias.reshape(1, Cout, 1, 1)

        assert out.shape == ref.shape, (out.shape, ref.shape)
        assert jnp.allclose(out, ref, atol=1e-4, rtol=1e-4), (
            f"mismatch vs XLA conv reference (stride={stride})")

    print("KERNEL_OK")
</pallas_src>

<mosaic_0001>
module attributes {stable_mosaic.version = 11 : i64} {
  func.func @_conv_tap_kernel(%arg0: i32, %arg1: i32, %arg2: memref<1x3x288x4xf32, #tpu.memory_space<vmem>>, %arg3: memref<9x8x4xf32, #tpu.memory_space<vmem>>, %arg4: memref<8x1xf32, #tpu.memory_space<vmem>>, %arg5: memref<1x8x256xf32, #tpu.memory_space<vmem>>) attributes {dimension_semantics = [#tpu.dimension_semantics<parallel>, #tpu.dimension_semantics<parallel>], iteration_bounds = array<i64: 2, 1>, scalar_prefetch = 0 : i64, scratch_operands = 0 : i64, tpu.core_type = #tpu.core_type<tc>, window_params = [{transform_indices = @transform_0, window_bounds = array<i64: 1, 3, 288, 4>}, {pipeline_mode = #tpu.pipeline_mode<synchronous>, transform_indices = @transform_1, window_bounds = array<i64: 9, 8, 4>}, {pipeline_mode = #tpu.pipeline_mode<synchronous>, transform_indices = @transform_2, window_bounds = array<i64: 8, 1>}, {transform_indices = @transform_3, window_bounds = array<i64: 1, 8, 256>}]} {
    %c256_i32 = arith.constant 256 : i32
    %0 = arith.muli %arg1, %c256_i32 : i32
    %cst = arith.constant 0.000000e+00 : f32
    %1 = vector.broadcast %cst : f32 to vector<8x256xf32>
    %c0_i32 = arith.constant 0 : i32
    %2 = arith.addi %0, %c0_i32 : i32
    %3 = tpu.assume_multiple %2, 16 : i32
    %c0 = arith.constant 0 : index
    %c0_0 = arith.constant 0 : index
    %4 = arith.index_cast %3 : i32 to index
    %c0_1 = arith.constant 0 : index
    %5 = vector.load %arg2[%c0, %c0_0, %4, %c0_1] : memref<1x3x288x4xf32, #tpu.memory_space<vmem>>, vector<1x1x256x4xf32>
    %6 = vector.shape_cast %5 : vector<1x1x256x4xf32> to vector<256x4xf32>
    %c0_2 = arith.constant 0 : index
    %c0_3 = arith.constant 0 : index
    %c0_4 = arith.constant 0 : index
    %7 = vector.load %arg3[%c0_2, %c0_3, %c0_4] : memref<9x8x4xf32, #tpu.memory_space<vmem>>, vector<1x8x4xf32>
    %8 = vector.shape_cast %7 : vector<1x8x4xf32> to vector<8x4xf32>
    %cst_5 = arith.constant dense<0.000000e+00> : vector<8x256xf32>
    %9 = tpu.matmul %8, %6, %cst_5 {dimension_numbers = #tpu.dot_dimension_numbers<[1], [1], [0], [0], [0, 0, 1, 0], [], []>} : vector<8x4xf32>, vector<256x4xf32>, vector<8x256xf32> -> vector<8x256xf32>
    %10 = arith.addf %1, %9 : vector<8x256xf32>
    %c0_i32_6 = arith.constant 0 : i32
    %11 = arith.addi %0, %c0_i32_6 : i32
    %12 = tpu.assume_multiple %11, 16 : i32
    %c0_7 = arith.constant 0 : index
    %c1 = arith.constant 1 : index
    %13 = arith.index_cast %12 : i32 to index
    %c0_8 = arith.constant 0 : index
    %14 = vector.load %arg2[%c0_7, %c1, %13, %c0_8] : memref<1x3x288x4xf32, #tpu.memory_space<vmem>>, vector<1x1x256x4xf32>
    %15 = vector.shape_cast %14 : vector<1x1x256x4xf32> to vector<256x4xf32>
    %c1_9 = arith.constant 1 : index
    %c0_10 = arith.constant 0 : index
    %c0_11 = arith.constant 0 : index
    %16 = vector.load %arg3[%c1_9, %c0_10, %c0_11] : memref<9x8x4xf32, #tpu.memory_space<vmem>>, vector<1x8x4xf32>
    %17 = vector.shape_cast %16 : vector<1x8x4xf32> to vector<8x4xf32>
    %cst_12 = arith.constant dense<0.000000e+00> : vector<8x256xf32>
    %18 = tpu.matmul %17, %15, %cst_12 {dimension_numbers = #tpu.dot_dimension_numbers<[1], [1], [0], [0], [0, 0, 1, 0], [], []>} : vector<8x4xf32>, vector<256x4xf32>, vector<8x256xf32> -> vector<8x256xf32>
    %19 = arith.addf %10, %18 : vector<8x256xf32>
    %c0_i32_13 = arith.constant 0 : i32
    %20 = arith.addi %0, %c0_i32_13 : i32
    %21 = tpu.assume_multiple %20, 16 : i32
    %c0_14 = arith.constant 0 : index
    %c2 = arith.constant 2 : index
    %22 = arith.index_cast %21 : i32 to index
    %c0_15 = arith.constant 0 : index
    %23 = vector.load %arg2[%c0_14, %c2, %22, %c0_15] : memref<1x3x288x4xf32, #tpu.memory_space<vmem>>, vector<1x1x256x4xf32>
    %24 = vector.shape_cast %23 : vector<1x1x256x4xf32> to vector<256x4xf32>
    %c2_16 = arith.constant 2 : index
    %c0_17 = arith.constant 0 : index
    %c0_18 = arith.constant 0 : index
    %25 = vector.load %arg3[%c2_16, %c0_17, %c0_18] : memref<9x8x4xf32, #tpu.memory_space<vmem>>, vector<1x8x4xf32>
    %26 = vector.shape_cast %25 : vector<1x8x4xf32> to vector<8x4xf32>
    %cst_19 = arith.constant dense<0.000000e+00> : vector<8x256xf32>
    %27 = tpu.matmul %26, %24, %cst_19 {dimension_numbers = #tpu.dot_dimension_numbers<[1], [1], [0], [0], [0, 0, 1, 0], [], []>} : vector<8x4xf32>, vector<256x4xf32>, vector<8x256xf32> -> vector<8x256xf32>
    %28 = arith.addf %19, %27 : vector<8x256xf32>
    %c16_i32 = arith.constant 16 : i32
    %29 = arith.addi %0, %c16_i32 : i32
    %30 = tpu.assume_multiple %29, 16 : i32
    %c0_20 = arith.constant 0 : index
    %c0_21 = arith.constant 0 : index
    %31 = arith.index_cast %30 : i32 to index
    %c0_22 = arith.constant 0 : index
    %32 = vector.load %arg2[%c0_20, %c0_21, %31, %c0_22] : memref<1x3x288x4xf32, #tpu.memory_space<vmem>>, vector<1x1x256x4xf32>
    %33 = vector.shape_cast %32 : vector<1x1x256x4xf32> to vector<256x4xf32>
    %c3 = arith.constant 3 : index
    %c0_23 = arith.constant 0 : index
    %c0_24 = arith.constant 0 : index
    %34 = vector.load %arg3[%c3, %c0_23, %c0_24] : memref<9x8x4xf32, #tpu.memory_space<vmem>>, vector<1x8x4xf32>
    %35 = vector.shape_cast %34 : vector<1x8x4xf32> to vector<8x4xf32>
    %cst_25 = arith.constant dense<0.000000e+00> : vector<8x256xf32>
    %36 = tpu.matmul %35, %33, %cst_25 {dimension_numbers = #tpu.dot_dimension_numbers<[1], [1], [0], [0], [0, 0, 1, 0], [], []>} : vector<8x4xf32>, vector<256x4xf32>, vector<8x256xf32> -> vector<8x256xf32>
    %37 = arith.addf %28, %36 : vector<8x256xf32>
    %c16_i32_26 = arith.constant 16 : i32
    %38 = arith.addi %0, %c16_i32_26 : i32
    %39 = tpu.assume_multiple %38, 16 : i32
    %c0_27 = arith.constant 0 : index
    %c1_28 = arith.constant 1 : index
    %40 = arith.index_cast %39 : i32 to index
    %c0_29 = arith.constant 0 : index
    %41 = vector.load %arg2[%c0_27, %c1_28, %40, %c0_29] : memref<1x3x288x4xf32, #tpu.memory_space<vmem>>, vector<1x1x256x4xf32>
    %42 = vector.shape_cast %41 : vector<1x1x256x4xf32> to vector<256x4xf32>
    %c4 = arith.constant 4 : index
    %c0_30 = arith.constant 0 : index
    %c0_31 = arith.constant 0 : index
    %43 = vector.load %arg3[%c4, %c0_30, %c0_31] : memref<9x8x4xf32, #tpu.memory_space<vmem>>, vector<1x8x4xf32>
    %44 = vector.shape_cast %43 : vector<1x8x4xf32> to vector<8x4xf32>
    %cst_32 = arith.constant dense<0.000000e+00> : vector<8x256xf32>
    %45 = tpu.matmul %44, %42, %cst_32 {dimension_numbers = #tpu.dot_dimension_numbers<[1], [1], [0], [0], [0, 0, 1, 0], [], []>} : vector<8x4xf32>, vector<256x4xf32>, vector<8x256xf32> -> vector<8x256xf32>
    %46 = arith.addf %37, %45 : vector<8x256xf32>
    %c16_i32_33 = arith.constant 16 : i32
    %47 = arith.addi %0, %c16_i32_33 : i32
    %48 = tpu.assume_multiple %47, 16 : i32
    %c0_34 = arith.constant 0 : index
    %c2_35 = arith.constant 2 : index
    %49 = arith.index_cast %48 : i32 to index
    %c0_36 = arith.constant 0 : index
    %50 = vector.load %arg2[%c0_34, %c2_35, %49, %c0_36] : memref<1x3x288x4xf32, #tpu.memory_space<vmem>>, vector<1x1x256x4xf32>
    %51 = vector.shape_cast %50 : vector<1x1x256x4xf32> to vector<256x4xf32>
    %c5 = arith.constant 5 : index
    %c0_37 = arith.constant 0 : index
    %c0_38 = arith.constant 0 : index
    %52 = vector.load %arg3[%c5, %c0_37, %c0_38] : memref<9x8x4xf32, #tpu.memory_space<vmem>>, vector<1x8x4xf32>
    %53 = vector.shape_cast %52 : vector<1x8x4xf32> to vector<8x4xf32>
    %cst_39 = arith.constant dense<0.000000e+00> : vector<8x256xf32>
    %54 = tpu.matmul %53, %51, %cst_39 {dimension_numbers = #tpu.dot_dimension_numbers<[1], [1], [0], [0], [0, 0, 1, 0], [], []>} : vector<8x4xf32>, vector<256x4xf32>, vector<8x256xf32> -> vector<8x256xf32>
    %55 = arith.addf %46, %54 : vector<8x256xf32>
    %c32_i32 = arith.constant 32 : i32
    %56 = arith.addi %0, %c32_i32 : i32
    %57 = tpu.assume_multiple %56, 16 : i32
    %c0_40 = arith.constant 0 : index
    %c0_41 = arith.constant 0 : index
    %58 = arith.index_cast %57 : i32 to index
    %c0_42 = arith.constant 0 : index
    %59 = vector.load %arg2[%c0_40, %c0_41, %58, %c0_42] : memref<1x3x288x4xf32, #tpu.memory_space<vmem>>, vector<1x1x256x4xf32>
    %60 = vector.shape_cast %59 : vector<1x1x256x4xf32> to vector<256x4xf32>
    %c6 = arith.constant 6 : index
    %c0_43 = arith.constant 0 : index
    %c0_44 = arith.constant 0 : index
    %61 = vector.load %arg3[%c6, %c0_43, %c0_44] : memref<9x8x4xf32, #tpu.memory_space<vmem>>, vector<1x8x4xf32>
    %62 = vector.shape_cast %61 : vector<1x8x4xf32> to vector<8x4xf32>
    %cst_45 = arith.constant dense<0.000000e+00> : vector<8x256xf32>
    %63 = tpu.matmul %62, %60, %cst_45 {dimension_numbers = #tpu.dot_dimension_numbers<[1], [1], [0], [0], [0, 0, 1, 0], [], []>} : vector<8x4xf32>, vector<256x4xf32>, vector<8x256xf32> -> vector<8x256xf32>
    %64 = arith.addf %55, %63 : vector<8x256xf32>
    %c32_i32_46 = arith.constant 32 : i32
    %65 = arith.addi %0, %c32_i32_46 : i32
    %66 = tpu.assume_multiple %65, 16 : i32
    %c0_47 = arith.constant 0 : index
    %c1_48 = arith.constant 1 : index
    %67 = arith.index_cast %66 : i32 to index
    %c0_49 = arith.constant 0 : index
    %68 = vector.load %arg2[%c0_47, %c1_48, %67, %c0_49] : memref<1x3x288x4xf32, #tpu.memory_space<vmem>>, vector<1x1x256x4xf32>
    %69 = vector.shape_cast %68 : vector<1x1x256x4xf32> to vector<256x4xf32>
    %c7 = arith.constant 7 : index
    %c0_50 = arith.constant 0 : index
    %c0_51 = arith.constant 0 : index
    %70 = vector.load %arg3[%c7, %c0_50, %c0_51] : memref<9x8x4xf32, #tpu.memory_space<vmem>>, vector<1x8x4xf32>
    %71 = vector.shape_cast %70 : vector<1x8x4xf32> to vector<8x4xf32>
    %cst_52 = arith.constant dense<0.000000e+00> : vector<8x256xf32>
    %72 = tpu.matmul %71, %69, %cst_52 {dimension_numbers = #tpu.dot_dimension_numbers<[1], [1], [0], [0], [0, 0, 1, 0], [], []>} : vector<8x4xf32>, vector<256x4xf32>, vector<8x256xf32> -> vector<8x256xf32>
    %73 = arith.addf %64, %72 : vector<8x256xf32>
    %c32_i32_53 = arith.constant 32 : i32
    %74 = arith.addi %0, %c32_i32_53 : i32
    %75 = tpu.assume_multiple %74, 16 : i32
    %c0_54 = arith.constant 0 : index
    %c2_55 = arith.constant 2 : index
    %76 = arith.index_cast %75 : i32 to index
    %c0_56 = arith.constant 0 : index
    %77 = vector.load %arg2[%c0_54, %c2_55, %76, %c0_56] : memref<1x3x288x4xf32, #tpu.memory_space<vmem>>, vector<1x1x256x4xf32>
    %78 = vector.shape_cast %77 : vector<1x1x256x4xf32> to vector<256x4xf32>
    %c8 = arith.constant 8 : index
    %c0_57 = arith.constant 0 : index
    %c0_58 = arith.constant 0 : index
    %79 = vector.load %arg3[%c8, %c0_57, %c0_58] : memref<9x8x4xf32, #tpu.memory_space<vmem>>, vector<1x8x4xf32>
    %80 = vector.shape_cast %79 : vector<1x8x4xf32> to vector<8x4xf32>
    %cst_59 = arith.constant dense<0.000000e+00> : vector<8x256xf32>
    %81 = tpu.matmul %80, %78, %cst_59 {dimension_numbers = #tpu.dot_dimension_numbers<[1], [1], [0], [0], [0, 0, 1, 0], [], []>} : vector<8x4xf32>, vector<256x4xf32>, vector<8x256xf32> -> vector<8x256xf32>
    %82 = arith.addf %73, %81 : vector<8x256xf32>
    %c0_60 = arith.constant 0 : index
    %c0_61 = arith.constant 0 : index
    %83 = vector.load %arg4[%c0_60, %c0_61] : memref<8x1xf32, #tpu.memory_space<vmem>>, vector<8x1xf32>
    %84 = vector.broadcast %83 : vector<8x1xf32> to vector<8x256xf32>
    %85 = arith.addf %82, %84 : vector<8x256xf32>
    %c0_62 = arith.constant 0 : index
    %c0_63 = arith.constant 0 : index
    %c0_64 = arith.constant 0 : index
    %86 = vector.load %arg5[%c0_62, %c0_63, %c0_64] : memref<1x8x256xf32, #tpu.memory_space<vmem>>, vector<1x8x256xf32>
    %87 = vector.shape_cast %86 : vector<1x8x256xf32> to vector<8x256xf32>
    %88 = vector.shape_cast %85 : vector<8x256xf32> to vector<1x8x256xf32>
    tpu.vector_store %arg5[%c0_62, %c0_63, %c0_64], %88 {strides = array<i32>} : memref<1x8x256xf32, #tpu.memory_space<vmem>>, vector<1x8x256xf32>,
    return
  }
  func.func @transform_0(%arg0: i32, %arg1: i32) -> (i32, i32, i32, i32) {
    %c0_i32 = arith.constant 0 : i32
    %c0_i32_0 = arith.constant 0 : i32
    %c0_i32_1 = arith.constant 0 : i32
    %c0_i32_2 = arith.constant 0 : i32
    return %arg0, %c0_i32, %c0_i32_0, %c0_i32_1 : i32, i32, i32, i32
  }
  func.func @transform_1(%arg0: i32, %arg1: i32) -> (i32, i32, i32) {
    %c0_i32 = arith.constant 0 : i32
    %c0_i32_0 = arith.constant 0 : i32
    %c0_i32_1 = arith.constant 0 : i32
    %c0_i32_2 = arith.constant 0 : i32
    return %c0_i32, %c0_i32_0, %c0_i32_1 : i32, i32, i32
  }
  func.func @transform_2(%arg0: i32, %arg1: i32) -> (i32, i32) {
    %c0_i32 = arith.constant 0 : i32
    %c0_i32_0 = arith.constant 0 : i32
    %c0_i32_1 = arith.constant 0 : i32
    return %c0_i32, %c0_i32_0 : i32, i32
  }
  func.func @transform_3(%arg0: i32, %arg1: i32) -> (i32, i32, i32) {
    %c0_i32 = arith.constant 0 : i32
    %c0_i32_0 = arith.constant 0 : i32
    return %arg0, %c0_i32, %arg1 : i32, i32, i32
  }
}

</mosaic_0001>

<bundles_post_ra>
// kernel: conv_layer_forward.1
= control target key start
LH: loop header
LB: loop body
LE: loop exit
PB: predicated region body
PF: predicated region fallthrough
CT: control target
= control target key end

     0   :  { %s2553_s12 = smov 0   ;;  %s2555_s13 = smov 0   ;;  %s3504_s0 = inlined_call_operand.vmem [shape: f32[2,3,288,4], index: 0, kind: input, shape index: {}]   ;;  %s3505_s1 = inlined_call_operand.vmem [shape: f32[9,8,4], index: 1, kind: input, shape index: {}]   ;;  %s3506_s2 = inlined_call_operand.vmem [shape: f32[8,1], index: 2, kind: input, shape index: {}]   ;;  %s3507_s3 = inlined_call_operand.vmem [shape: f32[2,8,256], index: 3, kind: output, shape index: {}]  }
   0x1   :  { %s2557_s14 = smov 0  }
   0x2 LB: > { %s25_s15 = sadd.s32 1, %s2526_s13  ;;  %p1904_p0 = scmp.ge.s32.totalorder %s2530_s14, 1  ;;  %s2530_s14 = sphi %s2557_s14, %s13_s14   ;;  %s2526_s13 = sphi %s2555_s13, %s3619_s13   ;;  %s2522_s12 = sphi %s2553_s12, %s3618_s12  }
   0x3   : > { %p27_p1 = scmp.ge.s32.totalorder %s25_s15, 2  ;;  %p151_p2 = scmp.lt.s32.totalorder %s2530_s14, 3 }
   0x5   : > { %s3621_s15 = smov (%p27_p1, %s25_s15), 0  ;;  %p152_p3 = pnand %p1904_p0, %p151_p2 }
   0x7   : > { %155 = sbr.rel (%p152_p3) target bundleno = 470 (0x1d6), region = 32 }
   0xc   : > { %p179_p4 = scmp.lt.s32.totalorder %s2522_s12, 1  ;;  %vm265_vm0 = vcmask 31744  }
   0xe   : > { %s3623_s12 = smov (!%p179_p4, %s2522_s12), 1 }
   0xf   : > { %s2481_s16 = smul.u32 864, %s3623_s12  ;;  %s2480_s17 = sshll.u32 %s3623_s12, 4 }
  0x10   : > { %s192_s20 = scalar_lea.vmem %s3507_s3, %s2480_s17 }
  0x11   : > { %s2577_s19 = scalar_lea.vmem %s3504_s0, %s2481_s16 }
  0x12   : > { %v2580_v0 = vld [vmem:[%s2577_s19 + $0x198] sm:$0xff]  ;;  %v2600_v4 = vld [vmem:[%s2577_s19 + $0x190] sm:$0xff]  ;;  %v2620_v8 = vld [vmem:[%s2577_s19 + $0x188] sm:$0xff] }
  0x13   : > { %v2583_v1 = vld [vmem:[%s2577_s19 + $0x218] sm:$0xff]  ;;  %1941 = vmatpush.xpose.msk.msra.mxu0 %vm265_vm0, %v2580_v0  ;;  %v2603_v5 = vld [vmem:[%s2577_s19 + $0x210] sm:$0xff]  ;;  %v2623_v9 = vld [vmem:[%s2577_s19 + $0x208] sm:$0xff] }
  0x14   : > { %v2586_v2 = vld [vmem:[%s2577_s19 + $0x78] sm:$0xff]  ;;  %1958 = vmatpush.xpose.msk.msra.mxu1 %vm265_vm0, %v2583_v1  ;;  %v2606_v6 = vld [vmem:[%s2577_s19 + $0x70] sm:$0xff]  ;;  %v2626_v10 = vld [vmem:[%s2577_s19 + $0x68] sm:$0xff] }
  0x15   : > { %3546 = vst [vmem:[#allocation2_spill] sm:$0xff] %v2586_v2  ;;  %v2593_v3 = vld [vmem:[%s2577_s19 + $0xf8] sm:$0xff]  ;;  %1975 = vmatpush.xpose.msk.msra.mxu2 %vm265_vm0, %v2586_v2  ;;  %v2609_v7 = vld [vmem:[%s2577_s19 + $0xf0] sm:$0xff]  ;;  %v2629_v11 = vld [vmem:[%s2577_s19 + $0xe8] sm:$0xff] }
  0x16   : > { %3547 = vst [vmem:[#allocation3_spill] sm:$0xff] %v2593_v3  ;;  %1992 = vmatpush.xpose.msk.msra.mxu3 %vm265_vm0, %v2593_v3  ;;  %v2640_v12 = vld [vmem:[%s2577_s19 + $0x180] sm:$0xff]  ;;  %v2660_v16 = vld [vmem:[%s2577_s19 + $0x178] sm:$0xff]  ;;  %v2680_v20 = vld [vmem:[%s2577_s19 + $0x170] sm:$0xff] }
  0x17   : > { %3548 = vst [vmem:[#allocation4_spill] sm:$0xff] %v2606_v6  ;;  %1942 = vmatpush.xpose.msk.msra.mxu0 %vm265_vm0, %v2600_v4  ;;  %v2643_v13 = vld [vmem:[%s2577_s19 + $0x200] sm:$0xff]  ;;  %v2663_v17 = vld [vmem:[%s2577_s19 + $0x1f8] sm:$0xff]  ;;  %v2683_v21 = vld [vmem:[%s2577_s19 + $0x1f0] sm:$0xff] }
  0x18   : > { %3549 = vst [vmem:[#allocation5_spill] sm:$0xff] %v2609_v7  ;;  %1959 = vmatpush.xpose.msk.msra.mxu1 %vm265_vm0, %v2603_v5  ;;  %v2646_v14 = vld [vmem:[%s2577_s19 + $0x60] sm:$0xff]  ;;  %v2666_v18 = vld [vmem:[%s2577_s19 + $0x58] sm:$0xff]  ;;  %v2686_v22 = vld [vmem:[%s2577_s19 + $0x50] sm:$0xff] }
  0x19   : > { %1976 = vmatpush.xpose.msk.msra.mxu2 %vm265_vm0, %v2606_v6  ;;  %3550 = vst [vmem:[#allocation6_spill] sm:$0xff] %v2626_v10  ;;  %v2649_v15 = vld [vmem:[%s2577_s19 + $0xe0] sm:$0xff]  ;;  %v2669_v19 = vld [vmem:[%s2577_s19 + $0xd8] sm:$0xff]  ;;  %v2689_v23 = vld [vmem:[%s2577_s19 + $0xd0] sm:$0xff] }
  0x1a   : > { %1993 = vmatpush.xpose.msk.msra.mxu3 %vm265_vm0, %v2609_v7  ;;  %3551 = vst [vmem:[#allocation7_spill] sm:$0xff] %v2629_v11  ;;  %v2700_v24 = vld [vmem:[%s2577_s19 + $0x168] sm:$0xff]  ;;  %v2720_v28 = vld [vmem:[%s2577_s19 + $0x160] sm:$0xff]  ;;  %v2740_v32 = vld [vmem:[%s2577_s19 + $0x158] sm:$0xff] }
  0x1b   : > { %1943 = vmatpush.xpose.msk.msra.mxu0 %vm265_vm0, %v2620_v8  ;;  %3552 = vst [vmem:[#allocation8_spill] sm:$0xff] %v2646_v14  ;;  %v2703_v25 = vld [vmem:[%s2577_s19 + $0x1e8] sm:$0xff]  ;;  %v2723_v29 = vld [vmem:[%s2577_s19 + $0x1e0] sm:$0xff]  ;;  %v2743_v33 = vld [vmem:[%s2577_s19 + $0x1d8] sm:$0xff] }
  0x1c   : > { %1960 = vmatpush.xpose.msk.msra.mxu1 %vm265_vm0, %v2623_v9  ;;  %3553 = vst [vmem:[#allocation9_spill] sm:$0xff] %v2649_v15  ;;  %v2706_v26 = vld [vmem:[%s2577_s19 + $0x48] sm:$0xff]  ;;  %v2726_v30 = vld [vmem:[%s2577_s19 + $0x40] sm:$0xff]  ;;  %v2746_v34 = vld [vmem:[%s2577_s19 + $0x38] sm:$0xff] }
  0x1d   : > { %1977 = vmatpush.xpose.msk.msra.mxu2 %vm265_vm0, %v2626_v10  ;;  %3554 = vst [vmem:[#allocation10_spill] sm:$0xff] %v2666_v18  ;;  %v2709_v27 = vld [vmem:[%s2577_s19 + $0xc8] sm:$0xff]  ;;  %v2729_v31 = vld [vmem:[%s2577_s19 + $0xc0] sm:$0xff]  ;;  %v2749_v35 = vld [vmem:[%s2577_s19 + $0xb8] sm:$0xff] }
  0x1e   : > { %1994 = vmatpush.xpose.msk.msra.mxu3 %vm265_vm0, %v2629_v11  ;;  %3555 = vst [vmem:[#allocation11_spill] sm:$0xff] %v2669_v19  ;;  %v2760_v36 = vld [vmem:[%s2577_s19 + $0x150] sm:$0xff]  ;;  %v2780_v40 = vld [vmem:[%s2577_s19 + $0x148] sm:$0xff]  ;;  %v2800_v44 = vld [vmem:[%s2577_s19 + $0x140] sm:$0xff] }
  0x1f   : > { %1944 = vmatpush.xpose.msk.msra.mxu0 %vm265_vm0, %v2640_v12  ;;  %3556 = vst [vmem:[#allocation12_spill] sm:$0xff] %v2686_v22  ;;  %v2763_v37 = vld [vmem:[%s2577_s19 + $0x1d0] sm:$0xff]  ;;  %v2783_v41 = vld [vmem:[%s2577_s19 + $0x1c8] sm:$0xff]  ;;  %v2803_v45 = vld [vmem:[%s2577_s19 + $0x1c0] sm:$0xff] }
  0x20   : > { %1961 = vmatpush.xpose.msk.msra.mxu1 %vm265_vm0, %v2643_v13  ;;  %3557 = vst [vmem:[#allocation13_spill] sm:$0xff] %v2689_v23  ;;  %v2766_v38 = vld [vmem:[%s2577_s19 + $0x30] sm:$0xff]  ;;  %v2786_v42 = vld [vmem:[%s2577_s19 + $0x28] sm:$0xff]  ;;  %v2806_v46 = vld [vmem:[%s2577_s19 + $0x20] sm:$0xff] }
  0x21   : > { %1978 = vmatpush.xpose.msk.msra.mxu2 %vm265_vm0, %v2646_v14  ;;  %3558 = vst [vmem:[#allocation14_spill] sm:$0xff] %v2706_v26  ;;  %v2769_v39 = vld [vmem:[%s2577_s19 + $0xb0] sm:$0xff]  ;;  %v2789_v43 = vld [vmem:[%s2577_s19 + $0xa8] sm:$0xff]  ;;  %v2809_v47 = vld [vmem:[%s2577_s19 + $0xa0] sm:$0xff] }
  0x22   : > { %1995 = vmatpush.xpose.msk.msra.mxu3 %vm265_vm0, %v2649_v15  ;;  %3559 = vst [vmem:[#allocation15_spill] sm:$0xff] %v2709_v27  ;;  %v2820_v48 = vld [vmem:[%s2577_s19 + $0x138] sm:$0xff]  ;;  %v2840_v52 = vld [vmem:[%s2577_s19 + $0x130] sm:$0xff]  ;;  %v1909_v56 = vld [vmem:[%s2577_s19 + $0x128] sm:$0xff] }
  0x23   : > { %1945 = vmatpush.xpose.msk.msra.mxu0 %vm265_vm0, %v2660_v16  ;;  %3560 = vst [vmem:[#allocation16_spill] sm:$0xff] %v2726_v30  ;;  %v2823_v49 = vld [vmem:[%s2577_s19 + $0x1b8] sm:$0xff]  ;;  %v2843_v53 = vld [vmem:[%s2577_s19 + $0x1b0] sm:$0xff]  ;;  %v2861_v57 = vld [vmem:[%s2577_s19 + $0x1a8] sm:$0xff] }
  0x24   : > { %1962 = vmatpush.xpose.msk.msra.mxu1 %vm265_vm0, %v2663_v17  ;;  %3561 = vst [vmem:[#allocation17_spill] sm:$0xff] %v2729_v31  ;;  %v2826_v50 = vld [vmem:[%s2577_s19 + $0x18] sm:$0xff]  ;;  %v2846_v54 = vld [vmem:[%s2577_s19 + $0x10] sm:$0xff]  ;;  %v197_v58 = vld [vmem:[%s2577_s19 + $0x8] sm:$0xff] }
  0x25   : > { %1979 = vmatpush.xpose.msk.msra.mxu2 %vm265_vm0, %v2666_v18  ;;  %3562 = vst [vmem:[#allocation18_spill] sm:$0xff] %v2746_v34  ;;  %v2829_v51 = vld [vmem:[%s2577_s19 + $0x98] sm:$0xff]  ;;  %v2849_v55 = vld [vmem:[%s2577_s19 + $0x90] sm:$0xff]  ;;  %v2865_v59 = vld [vmem:[%s2577_s19 + $0x88] sm:$0xff] }
  0x26   : > { %1996 = vmatpush.xpose.msk.msra.mxu3 %vm265_vm0, %v2669_v19  ;;  %3563 = vst [vmem:[#allocation19_spill] sm:$0xff] %v2749_v35  ;;  %v1908_v60 = vld [vmem:[%s2577_s19 + $0x120] sm:$0xff] }
  0x27   : > { %1946 = vmatpush.xpose.msk.msra.mxu0 %vm265_vm0, %v2680_v20  ;;  %3564 = vst [vmem:[#allocation20_spill] sm:$0xff] %v2766_v38  ;;  %v2875_v61 = vld [vmem:[%s2577_s19 + $0x1a0] sm:$0xff] }
  0x28   : > { %1963 = vmatpush.xpose.msk.msra.mxu1 %vm265_vm0, %v2683_v21  ;;  %3565 = vst [vmem:[#allocation21_spill] sm:$0xff] %v2769_v39  ;;  %v196_v62 = vld [vmem:[%s2577_s19] sm:$0xff] }
  0x29   : > { %1980 = vmatpush.xpose.msk.msra.mxu2 %vm265_vm0, %v2686_v22  ;;  %3566 = vst [vmem:[#allocation22_spill] sm:$0xff] %v2786_v42  ;;  %v2879_v63 = vld [vmem:[%s2577_s19 + $0x80] sm:$0xff] }
  0x2a   : > { %1997 = vmatpush.xpose.msk.msra.mxu3 %vm265_vm0, %v2689_v23  ;;  %3567 = vst [vmem:[#allocation23_spill] sm:$0xff] %v2789_v43 }
  0x2b   : > { %1947 = vmatpush.xpose.msk.msra.mxu0 %vm265_vm0, %v2700_v24  ;;  %3568 = vst [vmem:[#allocation24_spill] sm:$0xff] %v2806_v46 }
  0x2c   : > { %1964 = vmatpush.xpose.msk.msra.mxu1 %vm265_vm0, %v2703_v25  ;;  %3569 = vst [vmem:[#allocation25_spill] sm:$0xff] %v2809_v47 }
  0x2d   : > { %1981 = vmatpush.xpose.msk.msra.mxu2 %vm265_vm0, %v2706_v26  ;;  %3570 = vst [vmem:[#allocation26_spill] sm:$0xff] %v2820_v48 }
  0x2e   : > { %1998 = vmatpush.xpose.msk.msra.mxu3 %vm265_vm0, %v2709_v27  ;;  %3571 = vst [vmem:[#allocation27_spill] sm:$0xff] %v2823_v49 }
  0x2f   : > { %1948 = vmatpush.xpose.msk.msra.mxu0 %vm265_vm0, %v2720_v28  ;;  %3572 = vst [vmem:[#allocation28_spill] sm:$0xff] %v2840_v52 }
  0x30   : > { %1965 = vmatpush.xpose.msk.msra.mxu1 %vm265_vm0, %v2723_v29  ;;  %3573 = vst [vmem:[#allocation29_spill] sm:$0xff] %v2843_v53 }
  0x31   : > { %1982 = vmatpush.xpose.msk.msra.mxu2 %vm265_vm0, %v2726_v30  ;;  %3574 = vst [vmem:[#allocation30_spill] sm:$0xff] %v2865_v59 }
  0x32   : > { %1999 = vmatpush.xpose.msk.msra.mxu3 %vm265_vm0, %v2729_v31  ;;  %3575 = vst [vmem:[#allocation31_spill] sm:$0xff] %v2879_v63 }
  0x33   : > { %1949 = vmatpush.xpose.msk.msra.mxu0 %vm265_vm0, %v2740_v32 }
  0x34   : > { %1966 = vmatpush.xpose.msk.msra.mxu1 %vm265_vm0, %v2743_v33 }
  0x35   : > { %1983 = vmatpush.xpose.msk.msra.mxu2 %vm265_vm0, %v2746_v34 }
  0x36   : > { %2000 = vmatpush.xpose.msk.msra.mxu3 %vm265_vm0, %v2749_v35 }
  0x37   : > { %1950 = vmatpush.xpose.msk.msra.mxu0 %vm265_vm0, %v2760_v36 }
  0x38   : > { %1967 = vmatpush.xpose.msk.msra.mxu1 %vm265_vm0, %v2763_v37 }
  0x39   : > { %1984 = vmatpush.xpose.msk.msra.mxu2 %vm265_vm0, %v2766_v38 }
  0x3a   : > { %2001 = vmatpush.xpose.msk.msra.mxu3 %vm265_vm0, %v2769_v39 }
  0x3b   : > { %1951 = vmatpush.xpose.msk.msra.mxu0 %vm265_vm0, %v2780_v40 }
  0x3c   : > { %1968 = vmatpush.xpose.msk.msra.mxu1 %vm265_vm0, %v2783_v41 }
  0x3d   : > { %1985 = vmatpush.xpose.msk.msra.mxu2 %vm265_vm0, %v2786_v42 }
  0x3e   : > { %2002 = vmatpush.xpose.msk.msra.mxu3 %vm265_vm0, %v2789_v43 }
  0x3f   : > { %1952 = vmatpush.xpose.msk.msra.mxu0 %vm265_vm0, %v2800_v44 }
  0x40   : > { %1969 = vmatpush.xpose.msk.msra.mxu1 %vm265_vm0, %v2803_v45 }
  0x41   : > { %1986 = vmatpush.xpose.msk.msra.mxu2 %vm265_vm0, %v2806_v46 }
  0x42   : > { %2003 = vmatpush.xpose.msk.msra.mxu3 %vm265_vm0, %v2809_v47 }
  0x43   : > { %1953 = vmatpush.xpose.msk.msra.mxu0 %vm265_vm0, %v2820_v48  ;;  %v228_v48 = vld [vmem:[%s3505_s1] sm:$0xff] }
  0x44   : > { %1970 = vmatpush.xpose.msk.msra.mxu1 %vm265_vm0, %v2823_v49  ;;  %v2967_v49 = vld [vmem:[%s2577_s19 + $0x310] sm:$0xff] }
  0x45   : > { %1987 = vmatpush.xpose.msk.msra.mxu2 %vm265_vm0, %v2826_v50 }
  0x46   : > { %2004 = vmatpush.xpose.msk.msra.mxu3 %vm265_vm0, %v2829_v51 }
  0x47   : > { %1954 = vmatpush.xpose.msk.msra.mxu0 %vm265_vm0, %v2840_v52  ;;  %v2911_v52 = vld [vmem:[%s2577_s19 + $0x100] sm:$0xff] }
  0x48   : > { %1971 = vmatpush.xpose.msk.msra.mxu1 %vm265_vm0, %v2843_v53  ;;  %v2882_v53 = vld [vmem:[%s2577_s19 + $0x2b8] sm:$0xff]  ;;  %3577 = vst [vmem:[#allocation33_spill] sm:$0xff] %v2911_v52 }
  0x49   : > { %1988 = vmatpush.xpose.msk.msra.mxu2 %vm265_vm0, %v2846_v54 }
  0x4a   : > { %2005 = vmatpush.xpose.msk.msra.mxu3 %vm265_vm0, %v2849_v55 }
  0x4b   : > { %1955 = vmatpush.xpose.msk.msra.mxu0 %vm265_vm0, %v1909_v56  ;;  %v2885_v56 = vld [vmem:[%s2577_s19 + $0x338] sm:$0xff] }
  0x4c   : > { %1972 = vmatpush.xpose.msk.msra.mxu1 %vm265_vm0, %v2861_v57 }
  0x4d   : > { %1989 = vmatpush.xpose.msk.msra.mxu2 %vm265_vm0, %v197_v58  ;;  %v2891_v58 = vld [vmem:[%s2577_s19 + $0x108] sm:$0xff] }
  0x4e   : > { %2006 = vmatpush.xpose.msk.msra.mxu3 %vm265_vm0, %v2865_v59  ;;  %3576 = vst [vmem:[#allocation32_spill] sm:$0xff] %v2891_v58 }
  0x4f   : > { %1956 = vmatpush.xpose.msk.msra.mxu0 %vm265_vm0, %v1908_v60  ;;  %v2905_v60 = vld [vmem:[%s2577_s19 + $0x2b0] sm:$0xff] }
  0x50   : > { %1973 = vmatpush.xpose.msk.msra.mxu1 %vm265_vm0, %v2875_v61 }
  0x51   : > { %1990 = vmatpush.xpose.msk.msra.mxu2 %vm265_vm0, %v196_v62  ;;  %v2908_v62 = vld [vmem:[%s2577_s19 + $0x330] sm:$0xff] }
  0x52   : > { %2007 = vmatpush.xpose.msk.msra.mxu3 %vm265_vm0, %v2879_v63 }
  0x53   : > { %2042 = vmatpush.xpose.msk.msrb.mxu0 %vm265_vm0, %v2882_v53 }
  0x54   : > { %2059 = vmatpush.xpose.msk.msrb.mxu1 %vm265_vm0, %v2885_v56  ;;  %1991 = vmatmul.msk.f32.vlgmr.msra.gmra.mxu2 %vm265_vm0, %v228_v48 }
  0x55   : > { %2109 = vmatpush.xpose.msk.msrb.mxu2 %vm265_vm0, %v2865_v59  ;;  %v2925_v59 = vld [vmem:[%s2577_s19 + $0x328] sm:$0xff]  ;;  %2008 = vmatmul.msk.f32.vlgmr.msra.gmra.mxu3 %vm265_vm0, %v228_v48  ;;  %v3016_v48 = vld [vmem:[%s2577_s19 + $0x278] sm:$0xff] }
  0x56   : > { %2126 = vmatpush.xpose.msk.msrb.mxu3 %vm265_vm0, %v2891_v58  ;;  %v2922_v58 = vld [vmem:[%s2577_s19 + $0x2a8] sm:$0xff] }
  0x57   : > { %2043 = vmatpush.xpose.msk.msrb.mxu0 %vm265_vm0, %v2905_v60 }
  0x58   : > { %2060 = vmatpush.xpose.msk.msrb.mxu1 %vm265_vm0, %v2908_v62 }
  0x59   : > { %2110 = vmatpush.xpose.msk.msrb.mxu2 %vm265_vm0, %v2879_v63  ;;  %v2936_v63 = vld [vmem:[%s2577_s19 + $0x2a0] sm:$0xff] }
  0x5a   : > { %2127 = vmatpush.xpose.msk.msrb.mxu3 %vm265_vm0, %v2911_v52  ;;  %v2939_v52 = vld [vmem:[%s2577_s19 + $0x320] sm:$0xff] }
  0x5b   : > { %2044 = vmatpush.xpose.msk.msrb.mxu0 %vm265_vm0, %v2922_v58 }
  0x5c   : > { %2061 = vmatpush.xpose.msk.msrb.mxu1 %vm265_vm0, %v2925_v59 }
  0x5d   : > { %2111 = vmatpush.xpose.msk.msrb.mxu2 %vm265_vm0, %v2586_v2  ;;  %v2950_v2 = vld [vmem:[%s2577_s19 + $0x298] sm:$0xff] }
  0x5e   : > { %2128 = vmatpush.xpose.msk.msrb.mxu3 %vm265_vm0, %v2593_v3  ;;  %v2953_v3 = vld [vmem:[%s2577_s19 + $0x318] sm:$0xff] }
  0x5f   : > { %2045 = vmatpush.xpose.msk.msrb.mxu0 %vm265_vm0, %v2936_v63 }
  0x60   : > { %2062 = vmatpush.xpose.msk.msrb.mxu1 %vm265_vm0, %v2939_v52 }
  0x61   : > { %2112 = vmatpush.xpose.msk.msrb.mxu2 %vm265_vm0, %v2606_v6  ;;  %v2964_v6 = vld [vmem:[%s2577_s19 + $0x290] sm:$0xff] }
  0x62   : > { %2129 = vmatpush.xpose.msk.msrb.mxu3 %vm265_vm0, %v2609_v7  ;;  %v2974_v7 = vld [vmem:[%s2577_s19 + $0x288] sm:$0xff] }
  0x63   : > { %2046 = vmatpush.xpose.msk.msrb.mxu0 %vm265_vm0, %v2950_v2 }
  0x64   : > { %2063 = vmatpush.xpose.msk.msrb.mxu1 %vm265_vm0, %v2953_v3 }
  0x65   : > { %2113 = vmatpush.xpose.msk.msrb.mxu2 %vm265_vm0, %v2626_v10  ;;  %v1940_v10 = vld [vmem:[%s3505_s1 + $0x8] sm:$0xff] }
  0x66   : > { %2130 = vmatpush.xpose.msk.msrb.mxu3 %vm265_vm0, %v2629_v11  ;;  %v2981_v11 = vld [vmem:[%s2577_s19 + $0x308] sm:$0xff]  ;;  %1957 = vmatmul.msk.f32.vlgmr.msra.gmra.mxu0 %vm265_vm0, %v1940_v10 }
  0x67   : > { %2047 = vmatpush.xpose.msk.msrb.mxu0 %vm265_vm0, %v2964_v6  ;;  %1974 = vmatmul.msk.f32.vlgmr.msra.gmra.mxu1 %vm265_vm0, %v1940_v10  ;;  %v3005_v10 = vld [vmem:[%s2577_s19 + $0x300] sm:$0xff] }
  0x68   : > { %2064 = vmatpush.xpose.msk.msrb.mxu1 %vm265_vm0, %v2967_v49 }
  0x69   : > { %2114 = vmatpush.xpose.msk.msrb.mxu2 %vm265_vm0, %v2646_v14  ;;  %v3147_v14 = vld [vmem:[%s2577_s19 + $0x340] sm:$0xff] }
  0x6a   : > { %2131 = vmatpush.xpose.msk.msrb.mxu3 %vm265_vm0, %v2649_v15  ;;  %v3002_v15 = vld [vmem:[%s2577_s19 + $0x280] sm:$0xff] }
  0x6b   : > { %2048 = vmatpush.xpose.msk.msrb.mxu0 %vm265_vm0, %v2974_v7 }
  0x6c   : > { %2065 = vmatpush.xpose.msk.msrb.mxu1 %vm265_vm0, %v2981_v11 }
  0x6d   : > { %2115 = vmatpush.xpose.msk.msrb.mxu2 %vm265_vm0, %v2666_v18  ;;  %v3101_v18 = vld [vmem:[%s2577_s19 + $0x2c8] sm:$0xff] }
  0x6e   : > { %2132 = vmatpush.xpose.msk.msrb.mxu3 %vm265_vm0, %v2669_v19  ;;  %v3019_v19 = vld [vmem:[%s2577_s19 + $0x2f8] sm:$0xff] }
  0x6f   : > { %2049 = vmatpush.xpose.msk.msrb.mxu0 %vm265_vm0, %v3002_v15 }
  0x70   : > { %2066 = vmatpush.xpose.msk.msrb.mxu1 %vm265_vm0, %v3005_v10 }
  0x71   : > { %2116 = vmatpush.xpose.msk.msrb.mxu2 %vm265_vm0, %v2686_v22  ;;  %v3030_v22 = vld [vmem:[%s2577_s19 + $0x270] sm:$0xff] }
  0x72   : > { %2133 = vmatpush.xpose.msk.msrb.mxu3 %vm265_vm0, %v2689_v23  ;;  %v3033_v23 = vld [vmem:[%s2577_s19 + $0x2f0] sm:$0xff] }
  0x73   : > { %2050 = vmatpush.xpose.msk.msrb.mxu0 %vm265_vm0, %v3016_v48 }
  0x74   : > { %2067 = vmatpush.xpose.msk.msrb.mxu1 %vm265_vm0, %v3019_v19 }
  0x75   : > { %2117 = vmatpush.xpose.msk.msrb.mxu2 %vm265_vm0, %v2706_v26  ;;  %v3044_v26 = vld [vmem:[%s2577_s19 + $0x268] sm:$0xff] }
  0x76   : > { %2134 = vmatpush.xpose.msk.msrb.mxu3 %vm265_vm0, %v2709_v27  ;;  %3578 = vst [vmem:[#allocation34_spill] sm:$0xff] %v3044_v26  ;;  %v3047_v27 = vld [vmem:[%s2577_s19 + $0x2e8] sm:$0xff] }
  0x77   : > { %2051 = vmatpush.xpose.msk.msrb.mxu0 %vm265_vm0, %v3030_v22  ;;  %3579 = vst [vmem:[#allocation35_spill] sm:$0xff] %v3047_v27 }
  0x78   : > { %2068 = vmatpush.xpose.msk.msrb.mxu1 %vm265_vm0, %v3033_v23 }
  0x79   : > { %2118 = vmatpush.xpose.msk.msrb.mxu2 %vm265_vm0, %v2726_v30  ;;  %v3058_v30 = vld [vmem:[%s2577_s19 + $0x260] sm:$0xff] }
  0x7a   : > { %2135 = vmatpush.xpose.msk.msrb.mxu3 %vm265_vm0, %v2729_v31  ;;  %3580 = vst [vmem:[#allocation36_spill] sm:$0xff] %v3058_v30  ;;  %v3061_v31 = vld [vmem:[%s2577_s19 + $0x2e0] sm:$0xff] }
  0x7b   : > { %2052 = vmatpush.xpose.msk.msrb.mxu0 %vm265_vm0, %v3044_v26  ;;  %3581 = vst [vmem:[#allocation37_spill] sm:$0xff] %v3061_v31 }
  0x7c   : > { %2069 = vmatpush.xpose.msk.msrb.mxu1 %vm265_vm0, %v3047_v27 }
  0x7d   : > { %2119 = vmatpush.xpose.msk.msrb.mxu2 %vm265_vm0, %v2746_v34  ;;  %v3072_v34 = vld [vmem:[%s2577_s19 + $0x258] sm:$0xff] }
  0x7e   : > { %2136 = vmatpush.xpose.msk.msrb.mxu3 %vm265_vm0, %v2749_v35  ;;  %v3075_v35 = vld [vmem:[%s2577_s19 + $0x2d8] sm:$0xff] }
  0x7f   : > { %2053 = vmatpush.xpose.msk.msrb.mxu0 %vm265_vm0, %v3058_v30 }
  0x80   : > { %2070 = vmatpush.xpose.msk.msrb.mxu1 %vm265_vm0, %v3061_v31 }
  0x81   : > { %2120 = vmatpush.xpose.msk.msrb.mxu2 %vm265_vm0, %v2766_v38  ;;  %v3089_v38 = vld [vmem:[%s2577_s19 + $0x2d0] sm:$0xff] }
  0x82   : > { %2137 = vmatpush.xpose.msk.msrb.mxu3 %vm265_vm0, %v2769_v39  ;;  %v3086_v39 = vld [vmem:[%s2577_s19 + $0x250] sm:$0xff] }
  0x83   : > { %2054 = vmatpush.xpose.msk.msrb.mxu0 %vm265_vm0, %v3072_v34 }
  0x84   : > { %2071 = vmatpush.xpose.msk.msrb.mxu1 %vm265_vm0, %v3075_v35 }
  0x85   : > { %2121 = vmatpush.xpose.msk.msrb.mxu2 %vm265_vm0, %v2786_v42  ;;  %v2010_v42 = vld [vmem:[%s2577_s19 + $0x248] sm:$0xff] }
  0x86   : > { %2138 = vmatpush.xpose.msk.msrb.mxu3 %vm265_vm0, %v2789_v43  ;;  %v2009_v43 = vld [vmem:[%s2577_s19 + $0x240] sm:$0xff] }
  0x87   : > { %2055 = vmatpush.xpose.msk.msrb.mxu0 %vm265_vm0, %v3086_v39 }
  0x88   : > { %2072 = vmatpush.xpose.msk.msrb.mxu1 %vm265_vm0, %v3089_v38 }
  0x89   : > { %2122 = vmatpush.xpose.msk.msrb.mxu2 %vm265_vm0, %v2806_v46  ;;  %v3112_v46 = vld [vmem:[%s2577_s19 + $0x2c0] sm:$0xff] }
  0x8a   : > { %2139 = vmatpush.xpose.msk.msrb.mxu3 %vm265_vm0, %v2809_v47  ;;  %v3115_v47 = vld [vmem:[%s2577_s19 + $0x228] sm:$0xff] }
  0x8b   : > { %2056 = vmatpush.xpose.msk.msrb.mxu0 %vm265_vm0, %v2010_v42  ;;  %v3121_v42 = vld [vmem:[%s2577_s19 + $0x348] sm:$0xff] }
  0x8c   : > { %2073 = vmatpush.xpose.msk.msrb.mxu1 %vm265_vm0, %v3101_v18 }
  0x8d   : > { %2123 = vmatpush.xpose.msk.msrb.mxu2 %vm265_vm0, %v2826_v50  ;;  %v2041_v50 = vld [vmem:[%s3505_s1 + $0x10] sm:$0xff] }
  0x8e   : > { %2140 = vmatpush.xpose.msk.msrb.mxu3 %vm265_vm0, %v2829_v51 }
  0x8f   : > { %2057 = vmatpush.xpose.msk.msrb.mxu0 %vm265_vm0, %v2009_v43  ;;  %v2108_v43 = vld [vmem:[%s3505_s1 + $0x18] sm:$0xff] }
  0x90   : > { %2074 = vmatpush.xpose.msk.msrb.mxu1 %vm265_vm0, %v3112_v46 }
  0x91   : > { %2124 = vmatpush.xpose.msk.msrb.mxu2 %vm265_vm0, %v2846_v54  ;;  %v3142_v54 = vld [vmem:[%s2577_s19 + $0x220] sm:$0xff] }
  0x92   : > { %2141 = vmatpush.xpose.msk.msrb.mxu3 %vm265_vm0, %v2849_v55  ;;  %2058 = vmatmul.msk.f32.vlgmr.msrb.gmra.mxu0 %vm265_vm0, %v2041_v50 }
  0x93   : > { %2176 = vmatpush.xpose.msk.msra.mxu0 %vm265_vm0, %v2861_v57  ;;  %2075 = vmatmul.msk.f32.vlgmr.msrb.gmra.mxu1 %vm265_vm0, %v2041_v50  ;;  %v3582_v50 = vld [vmem:[#allocation26_spill] sm:$0xff] }
  0x94   : > { %2193 = vmatpush.xpose.msk.msra.mxu1 %vm265_vm0, %v3115_v47  ;;  %2125 = vmatmul.msk.f32.vlgmr.msrb.gmra.mxu2 %vm265_vm0, %v2108_v43 }
  0x95   : > { %2243 = vmatpush.xpose.msk.msra.mxu2 %vm265_vm0, %v3101_v18  ;;  %2142 = vmatmul.msk.f32.vlgmr.msrb.gmra.mxu3 %vm265_vm0, %v2108_v43  ;;  %v3583_v43 = vld [vmem:[#allocation27_spill] sm:$0xff] }
  0x96   : > { %2260 = vmatpush.xpose.msk.msra.mxu3 %vm265_vm0, %v3121_v42 }
  0x97   : > { %2177 = vmatpush.xpose.msk.msra.mxu0 %vm265_vm0, %v2875_v61 }
  0x98   : > { %2194 = vmatpush.xpose.msk.msra.mxu1 %vm265_vm0, %v3142_v54 }
  0x99   : > { %2244 = vmatpush.xpose.msk.msra.mxu2 %vm265_vm0, %v3112_v46 }
  0x9a   : > { %2261 = vmatpush.xpose.msk.msra.mxu3 %vm265_vm0, %v3147_v14 }
  0x9b   : > { %2178 = vmatpush.xpose.msk.msra.mxu0 %vm265_vm0, %v2580_v0 }
  0x9c   : > { %2195 = vmatpush.xpose.msk.msra.mxu1 %vm265_vm0, %v2583_v1 }
  0x9d   : > { %2245 = vmatpush.xpose.msk.msra.mxu2 %vm265_vm0, %v2882_v53 }
  0x9e   : > { %2262 = vmatpush.xpose.msk.msra.mxu3 %vm265_vm0, %v2885_v56 }
  0x9f   : > { %2179 = vmatpush.xpose.msk.msra.mxu0 %vm265_vm0, %v2600_v4 }
  0xa0   : > { %2196 = vmatpush.xpose.msk.msra.mxu1 %vm265_vm0, %v2603_v5 }
  0xa1   : > { %2246 = vmatpush.xpose.msk.msra.mxu2 %vm265_vm0, %v2905_v60 }
  0xa2   : > { %2263 = vmatpush.xpose.msk.msra.mxu3 %vm265_vm0, %v2908_v62 }
  0xa3   : > { %2180 = vmatpush.xpose.msk.msra.mxu0 %vm265_vm0, %v2620_v8 }
  0xa4   : > { %2197 = vmatpush.xpose.msk.msra.mxu1 %vm265_vm0, %v2623_v9 }
  0xa5   : > { %2247 = vmatpush.xpose.msk.msra.mxu2 %vm265_vm0, %v2922_v58 }
  0xa6   : > { %2264 = vmatpush.xpose.msk.msra.mxu3 %vm265_vm0, %v2925_v59 }
  0xa7   : > { %2181 = vmatpush.xpose.msk.msra.mxu0 %vm265_vm0, %v2640_v12 }
  0xa8   : > { %2198 = vmatpush.xpose.msk.msra.mxu1 %vm265_vm0, %v2643_v13 }
  0xa9   : > { %2248 = vmatpush.xpose.msk.msra.mxu2 %vm265_vm0, %v2936_v63 }
  0xaa   : > { %2265 = vmatpush.xpose.msk.msra.mxu3 %vm265_vm0, %v2939_v52 }
  0xab   : > { %2182 = vmatpush.xpose.msk.msra.mxu0 %vm265_vm0, %v2660_v16 }
  0xac   : > { %2199 = vmatpush.xpose.msk.msra.mxu1 %vm265_vm0, %v2663_v17 }
  0xad   : > { %2249 = vmatpush.xpose.msk.msra.mxu2 %vm265_vm0, %v2950_v2 }
  0xae   : > { %2266 = vmatpush.xpose.msk.msra.mxu3 %vm265_vm0, %v2953_v3 }
  0xaf   : > { %2183 = vmatpush.xpose.msk.msra.mxu0 %vm265_vm0, %v2680_v20 }
  0xb0   : > { %2200 = vmatpush.xpose.msk.msra.mxu1 %vm265_vm0, %v2683_v21 }
  0xb1   : > { %2250 = vmatpush.xpose.msk.msra.mxu2 %vm265_vm0, %v2964_v6 }
  0xb2   : > { %2267 = vmatpush.xpose.msk.msra.mxu3 %vm265_vm0, %v2967_v49 }
  0xb3   : > { %2184 = vmatpush.xpose.msk.msra.mxu0 %vm265_vm0, %v2700_v24 }
  0xb4   : > { %2201 = vmatpush.xpose.msk.msra.mxu1 %vm265_vm0, %v2703_v25 }
  0xb5   : > { %2251 = vmatpush.xpose.msk.msra.mxu2 %vm265_vm0, %v2974_v7 }
  0xb6   : > { %2268 = vmatpush.xpose.msk.msra.mxu3 %vm265_vm0, %v2981_v11 }
  0xb7   : > { %2185 = vmatpush.xpose.msk.msra.mxu0 %vm265_vm0, %v2720_v28 }
  0xb8   : > { %2202 = vmatpush.xpose.msk.msra.mxu1 %vm265_vm0, %v2723_v29 }
  0xb9   : > { %2252 = vmatpush.xpose.msk.msra.mxu2 %vm265_vm0, %v3002_v15 }
  0xba   : > { %2269 = vmatpush.xpose.msk.msra.mxu3 %vm265_vm0, %v3005_v10 }
  0xbb   : > { %2186 = vmatpush.xpose.msk.msra.mxu0 %vm265_vm0, %v2740_v32 }
  0xbc   : > { %2203 = vmatpush.xpose.msk.msra.mxu1 %vm265_vm0, %v2743_v33 }
  0xbd   : > { %2253 = vmatpush.xpose.msk.msra.mxu2 %vm265_vm0, %v3016_v48 }
  0xbe   : > { %2270 = vmatpush.xpose.msk.msra.mxu3 %vm265_vm0, %v3019_v19 }
  0xbf   : > { %2187 = vmatpush.xpose.msk.msra.mxu0 %vm265_vm0, %v2760_v36 }
  0xc0   : > { %2204 = vmatpush.xpose.msk.msra.mxu1 %vm265_vm0, %v2763_v37 }
  0xc1   : > { %2254 = vmatpush.xpose.msk.msra.mxu2 %vm265_vm0, %v3030_v22 }
  0xc2   : > { %2271 = vmatpush.xpose.msk.msra.mxu3 %vm265_vm0, %v3033_v23 }
  0xc3   : > { %2188 = vmatpush.xpose.msk.msra.mxu0 %vm265_vm0, %v2780_v40 }
  0xc4   : > { %2205 = vmatpush.xpose.msk.msra.mxu1 %vm265_vm0, %v2783_v41 }
  0xc5   : > { %2255 = vmatpush.xpose.msk.msra.mxu2 %vm265_vm0, %v3044_v26  ;;  %v3584_v26 = vld [vmem:[#allocation28_spill] sm:$0xff] }
  0xc6   : > { %2272 = vmatpush.xpose.msk.msra.mxu3 %vm265_vm0, %v3047_v27  ;;  %v2308_v27 = vld [vmem:[%s2577_s19 + $0x118] sm:$0xff] }
  0xc7   : > { %2189 = vmatpush.xpose.msk.msra.mxu0 %vm265_vm0, %v2800_v44 }
  0xc8   : > { %2206 = vmatpush.xpose.msk.msra.mxu1 %vm265_vm0, %v2803_v45 }
  0xc9   : > { %2256 = vmatpush.xpose.msk.msra.mxu2 %vm265_vm0, %v3058_v30  ;;  %v3585_v30 = vld [vmem:[#allocation29_spill] sm:$0xff] }
  0xca   : > { %2273 = vmatpush.xpose.msk.msra.mxu3 %vm265_vm0, %v3061_v31  ;;  %v2375_v31 = vld [vmem:[%s2577_s19 + $0x238] sm:$0xff] }
  0xcb   : > { %2190 = vmatpush.xpose.msk.msra.mxu0 %vm265_vm0, %v3582_v50  ;;  %v2374_v50 = vld [vmem:[%s2577_s19 + $0x230] sm:$0xff] }
  0xcc   : > { %2207 = vmatpush.xpose.msk.msra.mxu1 %vm265_vm0, %v3583_v43 }
  0xcd   : > { %2257 = vmatpush.xpose.msk.msra.mxu2 %vm265_vm0, %v3072_v34  ;;  %v2175_v34 = vld [vmem:[%s3505_s1 + $0x20] sm:$0xff] }
  0xce   : > { %2274 = vmatpush.xpose.msk.msra.mxu3 %vm265_vm0, %v3075_v35 }
  0xcf   : > { %2191 = vmatpush.xpose.msk.msra.mxu0 %vm265_vm0, %v3584_v26  ;;  %v2242_v26 = vld [vmem:[%s3505_s1 + $0x28] sm:$0xff] }
  0xd0   : > { %2208 = vmatpush.xpose.msk.msra.mxu1 %vm265_vm0, %v3585_v30 }
  0xd1   : > { %2258 = vmatpush.xpose.msk.msra.mxu2 %vm265_vm0, %v3086_v39  ;;  %v2307_v39 = vld [vmem:[%s2577_s19 + $0x110] sm:$0xff] }
  0xd2   : > { %2275 = vmatpush.xpose.msk.msra.mxu3 %vm265_vm0, %v3089_v38  ;;  %2192 = vmatmul.msk.f32.vlgmr.msra.gmra.mxu0 %vm265_vm0, %v2175_v34 }
  0xd3   : > { %2310 = vmatpush.xpose.msk.msrb.mxu0 %vm265_vm0, %v2829_v51  ;;  %2209 = vmatmul.msk.f32.vlgmr.msra.gmra.mxu1 %vm265_vm0, %v2175_v34  ;;  %v3588_v51 = vld [vmem:[#allocation31_spill] sm:$0xff] }
  0xd4   : > { %2327 = vmatpush.xpose.msk.msrb.mxu1 %vm265_vm0, %v2308_v27  ;;  %2259 = vmatmul.msk.f32.vlgmr.msra.gmra.mxu2 %vm265_vm0, %v2242_v26  ;;  %v3586_v27 = vld [vmem:[#allocation30_spill] sm:$0xff] }
  0xd5   : > { %2377 = vmatpush.xpose.msk.msrb.mxu2 %vm265_vm0, %v3583_v43  ;;  %2276 = vmatmul.msk.f32.vlgmr.msra.gmra.mxu3 %vm265_vm0, %v2242_v26  ;;  %v3591_v43 = vld [vmem:[#allocation3_spill] sm:$0xff] }
  0xd6   : > { %2394 = vmatpush.xpose.msk.msrb.mxu3 %vm265_vm0, %v2375_v31  ;;  %v3587_v31 = vld [vmem:[#allocation32_spill] sm:$0xff] }
  0xd7   : > { %2311 = vmatpush.xpose.msk.msrb.mxu0 %vm265_vm0, %v2849_v55  ;;  %v3589_v55 = vld [vmem:[#allocation33_spill] sm:$0xff] }
  0xd8   : > { %2328 = vmatpush.xpose.msk.msrb.mxu1 %vm265_vm0, %v2307_v39 }
  0xd9   : > { %2378 = vmatpush.xpose.msk.msrb.mxu2 %vm265_vm0, %v3585_v30  ;;  %v3590_v30 = vld [vmem:[#allocation2_spill] sm:$0xff] }
  0xda   : > { %2395 = vmatpush.xpose.msk.msrb.mxu3 %vm265_vm0, %v2374_v50 }
  0xdb   : > { %2312 = vmatpush.xpose.msk.msrb.mxu0 %vm265_vm0, %v3586_v27 }
  0xdc   : > { %2329 = vmatpush.xpose.msk.msrb.mxu1 %vm265_vm0, %v3587_v31 }
  0xdd   : > { %2379 = vmatpush.xpose.msk.msrb.mxu2 %vm265_vm0, %v2861_v57  ;;  %v3593_v57 = vld [vmem:[#allocation5_spill] sm:$0xff] }
  0xde   : > { %2396 = vmatpush.xpose.msk.msrb.mxu3 %vm265_vm0, %v3115_v47  ;;  %v3592_v47 = vld [vmem:[#allocation4_spill] sm:$0xff] }
  0xdf   : > { %2313 = vmatpush.xpose.msk.msrb.mxu0 %vm265_vm0, %v3588_v51 }
  0xe0   : > { %2330 = vmatpush.xpose.msk.msrb.mxu1 %vm265_vm0, %v3589_v55 }
  0xe1   : > { %2380 = vmatpush.xpose.msk.msrb.mxu2 %vm265_vm0, %v2875_v61  ;;  %v3594_v61 = vld [vmem:[#allocation6_spill] sm:$0xff] }
  0xe2   : > { %2397 = vmatpush.xpose.msk.msrb.mxu3 %vm265_vm0, %v3142_v54  ;;  %v3595_v54 = vld [vmem:[#allocation7_spill] sm:$0xff] }
  0xe3   : > { %2314 = vmatpush.xpose.msk.msrb.mxu0 %vm265_vm0, %v3590_v30 }
  0xe4   : > { %2331 = vmatpush.xpose.msk.msrb.mxu1 %vm265_vm0, %v3591_v43 }
  0xe5   : > { %2381 = vmatpush.xpose.msk.msrb.mxu2 %vm265_vm0, %v2580_v0  ;;  %v3596_v0 = vld [vmem:[#allocation8_spill] sm:$0xff] }
  0xe6   : > { %2398 = vmatpush.xpose.msk.msrb.mxu3 %vm265_vm0, %v2583_v1  ;;  %v3597_v1 = vld [vmem:[#allocation9_spill] sm:$0xff] }
  0xe7   : > { %2315 = vmatpush.xpose.msk.msrb.mxu0 %vm265_vm0, %v3592_v47 }
  0xe8   : > { %2332 = vmatpush.xpose.msk.msrb.mxu1 %vm265_vm0, %v3593_v57 }
  0xe9   : > { %2382 = vmatpush.xpose.msk.msrb.mxu2 %vm265_vm0, %v2600_v4  ;;  %v3598_v4 = vld [vmem:[#allocation10_spill] sm:$0xff] }
  0xea   : > { %2399 = vmatpush.xpose.msk.msrb.mxu3 %vm265_vm0, %v2603_v5  ;;  %v3599_v5 = vld [vmem:[#allocation11_spill] sm:$0xff] }
  0xeb   : > { %2316 = vmatpush.xpose.msk.msrb.mxu0 %vm265_vm0, %v3594_v61 }
  0xec   : > { %2333 = vmatpush.xpose.msk.msrb.mxu1 %vm265_vm0, %v3595_v54 }
  0xed   : > { %2383 = vmatpush.xpose.msk.msrb.mxu2 %vm265_vm0, %v2620_v8  ;;  %v3600_v8 = vld [vmem:[#allocation12_spill] sm:$0xff] }
  0xee   : > { %2400 = vmatpush.xpose.msk.msrb.mxu3 %vm265_vm0, %v2623_v9  ;;  %v3601_v9 = vld [vmem:[#allocation13_spill] sm:$0xff] }
  0xef   : > { %2317 = vmatpush.xpose.msk.msrb.mxu0 %vm265_vm0, %v3596_v0 }
  0xf0   : > { %2334 = vmatpush.xpose.msk.msrb.mxu1 %vm265_vm0, %v3597_v1 }
  0xf1   : > { %2384 = vmatpush.xpose.msk.msrb.mxu2 %vm265_vm0, %v2640_v12  ;;  %v3602_v12 = vld [vmem:[#allocation14_spill] sm:$0xff] }
  0xf2   : > { %2401 = vmatpush.xpose.msk.msrb.mxu3 %vm265_vm0, %v2643_v13  ;;  %v3603_v13 = vld [vmem:[#allocation15_spill] sm:$0xff] }
  0xf3   : > { %2318 = vmatpush.xpose.msk.msrb.mxu0 %vm265_vm0, %v3598_v4 }
  0xf4   : > { %2335 = vmatpush.xpose.msk.msrb.mxu1 %vm265_vm0, %v3599_v5 }
  0xf5   : > { %2385 = vmatpush.xpose.msk.msrb.mxu2 %vm265_vm0, %v2660_v16  ;;  %v3604_v16 = vld [vmem:[#allocation16_spill] sm:$0xff] }
  0xf6   : > { %2402 = vmatpush.xpose.msk.msrb.mxu3 %vm265_vm0, %v2663_v17  ;;  %v3605_v17 = vld [vmem:[#allocation17_spill] sm:$0xff] }
  0xf7   : > { %2319 = vmatpush.xpose.msk.msrb.mxu0 %vm265_vm0, %v3600_v8 }
  0xf8   : > { %2336 = vmatpush.xpose.msk.msrb.mxu1 %vm265_vm0, %v3601_v9 }
  0xf9   : > { %2386 = vmatpush.xpose.msk.msrb.mxu2 %vm265_vm0, %v2680_v20  ;;  %v3606_v20 = vld [vmem:[#allocation18_spill] sm:$0xff] }
  0xfa   : > { %2403 = vmatpush.xpose.msk.msrb.mxu3 %vm265_vm0, %v2683_v21  ;;  %v3607_v21 = vld [vmem:[#allocation19_spill] sm:$0xff] }
  0xfb   : > { %2320 = vmatpush.xpose.msk.msrb.mxu0 %vm265_vm0, %v3602_v12 }
  0xfc   : > { %2337 = vmatpush.xpose.msk.msrb.mxu1 %vm265_vm0, %v3603_v13 }
  0xfd   : > { %2387 = vmatpush.xpose.msk.msrb.mxu2 %vm265_vm0, %v2700_v24  ;;  %v3608_v24 = vld [vmem:[#allocation20_spill] sm:$0xff] }
  0xfe   : > { %2404 = vmatpush.xpose.msk.msrb.mxu3 %vm265_vm0, %v2703_v25  ;;  %v3609_v25 = vld [vmem:[#allocation21_spill] sm:$0xff] }
  0xff   : > { %2321 = vmatpush.xpose.msk.msrb.mxu0 %vm265_vm0, %v3604_v16 }
 0x100   : > { %2338 = vmatpush.xpose.msk.msrb.mxu1 %vm265_vm0, %v3605_v17 }
 0x101   : > { %2388 = vmatpush.xpose.msk.msrb.mxu2 %vm265_vm0, %v2720_v28  ;;  %v3610_v28 = vld [vmem:[#allocation22_spill] sm:$0xff] }
 0x102   : > { %2405 = vmatpush.xpose.msk.msrb.mxu3 %vm265_vm0, %v2723_v29  ;;  %v3611_v29 = vld [vmem:[#allocation23_spill] sm:$0xff] }
 0x103   : > { %2322 = vmatpush.xpose.msk.msrb.mxu0 %vm265_vm0, %v3606_v20 }
 0x104   : > { %2339 = vmatpush.xpose.msk.msrb.mxu1 %vm265_vm0, %v3607_v21 }
 0x105   : > { %2389 = vmatpush.xpose.msk.msrb.mxu2 %vm265_vm0, %v2740_v32  ;;  %v2442_v32 = vld [vmem:[%s2577_s19 + $0x358] sm:$0xff] }
 0x106   : > { %2406 = vmatpush.xpose.msk.msrb.mxu3 %vm265_vm0, %v2743_v33  ;;  %v3612_v33 = vld [vmem:[#allocation24_spill] sm:$0xff] }
 0x107   : > { %2323 = vmatpush.xpose.msk.msrb.mxu0 %vm265_vm0, %v3608_v24 }
 0x108   : > { %2340 = vmatpush.xpose.msk.msrb.mxu1 %vm265_vm0, %v3609_v25 }
 0x109   : > { %2390 = vmatpush.xpose.msk.msrb.mxu2 %vm265_vm0, %v2760_v36  ;;  %v3613_v36 = vld [vmem:[#allocation25_spill] sm:$0xff] }
 0x10a   : > { %2407 = vmatpush.xpose.msk.msrb.mxu3 %vm265_vm0, %v2763_v37  ;;  %v2309_v37 = vld [vmem:[%s3505_s1 + $0x30] sm:$0xff] }
 0x10b   : > { %2324 = vmatpush.xpose.msk.msrb.mxu0 %vm265_vm0, %v3610_v28 }
 0x10c   : > { %2341 = vmatpush.xpose.msk.msrb.mxu1 %vm265_vm0, %v3611_v29 }
 0x10d   : > { %2391 = vmatpush.xpose.msk.msrb.mxu2 %vm265_vm0, %v2780_v40  ;;  %v2376_v40 = vld [vmem:[%s3505_s1 + $0x38] sm:$0xff] }
 0x10e   : > { %2408 = vmatpush.xpose.msk.msrb.mxu3 %vm265_vm0, %v2783_v41  ;;  %v2441_v41 = vld [vmem:[%s2577_s19 + $0x350] sm:$0xff] }
 0x10f   : > { %2325 = vmatpush.xpose.msk.msrb.mxu0 %vm265_vm0, %v3612_v33 }
 0x110   : > { %2342 = vmatpush.xpose.msk.msrb.mxu1 %vm265_vm0, %v3613_v36 }
 0x111   : > { %2392 = vmatpush.xpose.msk.msrb.mxu2 %vm265_vm0, %v2800_v44 }
 0x112   : > { %2409 = vmatpush.xpose.msk.msrb.mxu3 %vm265_vm0, %v2803_v45  ;;  %2326 = vmatmul.msk.f32.vlgmr.msrb.gmra.mxu0 %vm265_vm0, %v2309_v37 }
 0x113   : > { %2444 = vmatpush.xpose.msk.msra.mxu0 %vm265_vm0, %v3075_v35  ;;  %2343 = vmatmul.msk.f32.vlgmr.msrb.gmra.mxu1 %vm265_vm0, %v2309_v37 }
 0x114   : > { %2461 = vmatpush.xpose.msk.msra.mxu1 %vm265_vm0, %v2442_v32  ;;  %2393 = vmatmul.msk.f32.vlgmr.msrb.gmra.mxu2 %vm265_vm0, %v2376_v40 }
 0x115   : > { %2410 = vmatmul.msk.f32.vlgmr.msrb.gmra.mxu3 %vm265_vm0, %v2376_v40 }
 0x117   : > { %2445 = vmatpush.xpose.msk.msra.mxu0 %vm265_vm0, %v3089_v38 }
 0x118   : > { %2462 = vmatpush.xpose.msk.msra.mxu1 %vm265_vm0, %v2441_v41 }
 0x11b   : > { %2446 = vmatpush.xpose.msk.msra.mxu0 %vm265_vm0, %v3101_v18  ;;  %v382_v18 = vpop.f32.mrf.mxu0 }
 0x11c   : > { %2463 = vmatpush.xpose.msk.msra.mxu1 %vm265_vm0, %v3121_v42 }
 0x11f   : > { %2447 = vmatpush.xpose.msk.msra.mxu0 %vm265_vm0, %v3112_v46 }
 0x120   : > { %2464 = vmatpush.xpose.msk.msra.mxu1 %vm265_vm0, %v3147_v14  ;;  %v1783_v14 = vld [vmem:[%s3506_s2] sm:$0xff] }
 0x123   : > { %2448 = vmatpush.xpose.msk.msra.mxu0 %vm265_vm0, %v2882_v53  ;;  %v696_v35 = vpop.f32.mrf.mxu0 }
 0x124   : > { %2465 = vmatpush.xpose.msk.msra.mxu1 %vm265_vm0, %v2885_v56 }
 0x127   : > { %2449 = vmatpush.xpose.msk.msra.mxu0 %vm265_vm0, %v2905_v60 }
 0x128   : > { %2466 = vmatpush.xpose.msk.msra.mxu1 %vm265_vm0, %v2908_v62 }
 0x12b   : > { %2450 = vmatpush.xpose.msk.msra.mxu0 %vm265_vm0, %v2922_v58 }
 0x12c   : > { %2467 = vmatpush.xpose.msk.msra.mxu1 %vm265_vm0, %v2925_v59 }
 0x12f   : > { %2451 = vmatpush.xpose.msk.msra.mxu0 %vm265_vm0, %v2936_v63 }
 0x130   : > { %2468 = vmatpush.xpose.msk.msra.mxu1 %vm265_vm0, %v2939_v52 }
 0x133   : > { %2452 = vmatpush.xpose.msk.msra.mxu0 %vm265_vm0, %v2950_v2  ;;  %v2532_v2 = vmov 0  }
 0x134   : > { %2469 = vmatpush.xpose.msk.msra.mxu1 %vm265_vm0, %v2953_v3  ;;  %2507 = vset.pattern.permute.xlu0 %v2532_v2  ;;  %v3614_v3 = vld [vmem:[#allocation34_spill] sm:$0xff] }
 0x135   : > { %1786 = vperm.xlu0 %2507, %v1783_v14  }
 0x137   : > { %2453 = vmatpush.xpose.msk.msra.mxu0 %vm265_vm0, %v2964_v6  ;;  %v3615_v6 = vld [vmem:[#allocation35_spill] sm:$0xff] }
 0x138   : > { %2470 = vmatpush.xpose.msk.msra.mxu1 %vm265_vm0, %v2967_v49 }
 0x13b   : > { %2454 = vmatpush.xpose.msk.msra.mxu0 %vm265_vm0, %v2974_v7  ;;  %v3616_v7 = vld [vmem:[#allocation36_spill] sm:$0xff] }
 0x13c   : > { %2471 = vmatpush.xpose.msk.msra.mxu1 %vm265_vm0, %v2981_v11  ;;  %v3617_v11 = vld [vmem:[#allocation37_spill] sm:$0xff] }
 0x13f   : > { %2455 = vmatpush.xpose.msk.msra.mxu0 %vm265_vm0, %v3002_v15  ;;  %v2443_v15 = vld [vmem:[%s3505_s1 + $0x40] sm:$0xff] }
 0x140   : > { %2472 = vmatpush.xpose.msk.msra.mxu1 %vm265_vm0, %v3005_v10 }
 0x143   : > { %2456 = vmatpush.xpose.msk.msra.mxu0 %vm265_vm0, %v3016_v48 }
 0x144   : > { %2473 = vmatpush.xpose.msk.msra.mxu1 %vm265_vm0, %v3019_v19  ;;  %v402_v19 = vpop.f32.mrf.mxu1 }
 0x147   : > { %2457 = vmatpush.xpose.msk.msra.mxu0 %vm265_vm0, %v3030_v22  ;;  %v521_v22 = vpop.f32.mrf.mxu2 }
 0x148   : > { %2474 = vmatpush.xpose.msk.msra.mxu1 %vm265_vm0, %v3033_v23  ;;  %v541_v23 = vpop.f32.mrf.mxu3  ;;  %v522_v52 = vadd.f32 %v521_v22, %v382_v18 }
 0x149   : > { %v542_v53 = vadd.f32 %v541_v23, %v402_v19 }
 0x14a   : > { %v719_v56 = vadd.f32 %v696_v35, %v522_v52 }
 0x14b   : > { %2458 = vmatpush.xpose.msk.msra.mxu0 %vm265_vm0, %v3614_v3 }
 0x14c   : > { %2475 = vmatpush.xpose.msk.msra.mxu1 %vm265_vm0, %v3615_v6  ;;  %v716_v38 = vpop.f32.mrf.mxu1 }
 0x14d   : > { %v720_v58 = vadd.f32 %v716_v38, %v542_v53 }
 0x14f   : > { %2459 = vmatpush.xpose.msk.msra.mxu0 %vm265_vm0, %v3616_v7  ;;  %v873_v44 = vpop.f32.mrf.mxu2  ;;  %v1050_v46 = vpop.f32.mrf.mxu0 }
 0x150   : > { %2476 = vmatpush.xpose.msk.msra.mxu1 %vm265_vm0, %v3617_v11  ;;  %v893_v45 = vpop.f32.mrf.mxu3  ;;  %v896_v60 = vadd.f32 %v873_v44, %v719_v56 }
 0x151   : > { %v897_v62 = vadd.f32 %v893_v45, %v720_v58 }
 0x152   : > { %2460 = vmatmul.msk.f32.vlgmr.msra.gmra.mxu0 %vm265_vm0, %v2443_v15  ;;  %v1073_v42 = vadd.f32 %v1050_v46, %v896_v60 }
 0x153   : > { %2477 = vmatmul.msk.f32.vlgmr.msra.gmra.mxu1 %vm265_vm0, %v2443_v15 }
 0x154   : > { %v1070_v49 = vpop.f32.mrf.mxu1 }
 0x155   : > { %v1074_v34 = vadd.f32 %v1070_v49, %v897_v62 }
 0x157   : > { %v1227_v59 = vpop.f32.mrf.mxu2 }
 0x158   : > { %v1247_v63 = vpop.f32.mrf.mxu3  ;;  %v1250_v26 = vadd.f32 %v1227_v59, %v1073_v42 }
 0x159   : > { %v1251_v39 = vadd.f32 %v1247_v63, %v1074_v34 }
 0x18f   : > { %v1404_v10 = vpop.f32.mrf.mxu0 }
 0x190   : > { %v1424_v48 = vpop.f32.mrf.mxu1  ;;  %v1427_v31 = vadd.f32 %v1404_v10, %v1250_v26 }
 0x191   : > { %v1428_v51 = vadd.f32 %v1424_v48, %v1251_v39 }
 0x197   : > { %v1581_v50 = vpop.f32.mrf.mxu2 }
 0x198   : > { %v1601_v27 = vpop.f32.mrf.mxu3  ;;  %v1604_v55 = vadd.f32 %v1581_v50, %v1427_v31 }
 0x199   : > { %v1605_v30 = vadd.f32 %v1601_v27, %v1428_v51 }
 0x1a7   : > { %v1787_v43 = vpop.permute.xlu0 %1786 }
 0x1cf   : > { %v1758_v47 = vpop.f32.mrf.mxu0 }
 0x1d0   : > { %v1778_v57 = vpop.f32.mrf.mxu1  ;;  %v1781_v61 = vadd.f32 %v1758_v47, %v1604_v55 }
 0x1d1   : > { %v1782_v54 = vadd.f32 %v1778_v57, %v1605_v30 }
 0x1d2   : > { %v1789_v0 = vadd.f32 %v1787_v43, %v1781_v61 }
 0x1d3   : > { %v1790_v1 = vadd.f32 %v1787_v43, %v1782_v54 }
 0x1d4   : > { %1791 = vst [vmem:[%s192_s20] sm:$0xff] %v1789_v0 }
 0x1d5   : > { %1792 = vst [vmem:[%s192_s20 + $0x8] sm:$0xff] %v1790_v1 }
 0x1d6 PF: > { %s13_s14 = sadd.s32 1, %s2530_s14   ;;  %s3618_s12 = smov %s2526_s13 }
 0x1d7   : > { %p10_p5 = scmp.ge.s32.totalorder %s13_s14, 4   ;;  %s3619_s13 = smov %s3621_s15 }
 0x1d9   :  { %12 = sbr.rel (!%p10_p5) target bundleno = 2 (0x2), region = 79 }

</bundles_post_ra>
